<compile_context>
chip_gen: v6e
topology: v6e:2x2x1
jax: 0.10.0
libtpu: 0.0.40
codegen_flags: <defaults>
</compile_context>

<pallas_src>
import functools

import jax
import jax.numpy as jnp
from jax import lax
from jax.experimental import pallas as pl
from jax.experimental.pallas import tpu as pltpu

# dot_general dimension numbers for A(m,k) x B(n,k) -> (m,n)  (transposed RHS;
# lowers natively on the MXU, same pattern as the TPU flash-attention kernel).
_TRANS_B = (((1,), (1,)), ((), ()))


def _mlp_kernel(x_ref, w1_ref, b1_ref, w2_ref, b2_ref, w3_ref, b3_ref, o_ref):
    # x tile arrives batch-major f32 (block_b, D); cast to bf16 in-kernel (VPU,
    # hidden under DMA/MXU work).  All activations are feature-major
    # (features, block_b): batch on lanes for every matmul and the output store.
    x_bf = x_ref[...].astype(jnp.bfloat16)                         # (block_b, D)

    # h1 = W1 @ x^T : (H1, D) x (block_b, D)^T -> (H1, block_b), f32 accumulate.
    h1 = lax.dot_general(w1_ref[...], x_bf, _TRANS_B,
                         preferred_element_type=jnp.float32) + b1_ref[...]
    h1 = jnp.maximum(h1, 0.0)                                      # ReLU

    # h2 = W2 @ h1 : (H2, H1) x (H1, block_b) -> (H2, block_b)
    h2 = jnp.dot(w2_ref[...], h1.astype(jnp.bfloat16),
                 preferred_element_type=jnp.float32) + b2_ref[...]
    h2 = jnp.maximum(h2, 0.0)                                      # ReLU

    # h3 = W3 @ h2 : (O, H2) x (H2, block_b) -> (O, block_b)  (lane-dense)
    h3 = jnp.dot(w3_ref[...], h2.astype(jnp.bfloat16),
                 preferred_element_type=jnp.float32) + b3_ref[...]

    # Exact sigmoid: exp on the EUP (tons of slack at O*block_b elems),
    # exact divide.  exp(-h3) -> inf for very negative h3 gives the correct 0.
    o_ref[...] = (1.0 / (1.0 + jnp.exp(-h3))).astype(o_ref.dtype)


def _round_up(v, m):
    return ((v + m - 1) // m) * m


def _pick_block_b(B):
    # Two parallel grid steps when the batch is big enough (both v7x TCs get
    # work); a single lane-aligned step for small batches so v5e/v6e don't pay
    # the per-step overhead twice for trivially small work.
    n = 2 if B > 256 else 1
    return min(_round_up(pl.cdiv(B, n), 128), 2048)


@functools.partial(jax.jit, static_argnames=("block_b",))
def transition_likelihood_nn(x, params, block_b=None):
    """Forward pass of TransitionLikelihoodNN.

    x: (B, input_dim) float32 (kept f32; bf16 cast happens in-kernel per tile)
    params: dict with PyTorch-native-layout, pre-cast parameters:
        w1 (64, D) bf16, b1 (64, 1) f32,
        w2 (64, 64) bf16, b2 (64, 1) f32,
        w3 (O, 64) bf16, b3 (O, 1) f32.
    Returns (B, O) float32 probabilities.
    """
    B, D = x.shape
    w1, b1 = params["w1"], params["b1"]
    w2, b2 = params["w2"], params["b2"]
    w3, b3 = params["w3"], params["b3"]
    H1 = w1.shape[0]
    H2 = w2.shape[0]
    O = w3.shape[0]

    if block_b is None:
        block_b = _pick_block_b(B)
    assert block_b % 128 == 0, "block_b must be a multiple of 128 (lane width)"

    n_blocks = pl.cdiv(B, block_b)
    B_pad = n_blocks * block_b
    # Only pad when B is not tile-aligned (single op; skipped entirely otherwise).
    x_p = x if B_pad == B else jnp.pad(x, ((0, B_pad - B), (0, 0)))

    cost = pl.CostEstimate(
        flops=2 * B_pad * (D * H1 + H1 * H2 + H2 * O),
        transcendentals=B_pad * O,  # exp
        bytes_accessed=(x_p.size * 4 + B_pad * O * 4
                        + (w1.size + w2.size + w3.size) * 2
                        + (b1.size + b2.size + b3.size) * 4),
    )

    out_t = pl.pallas_call(
        _mlp_kernel,
        out_shape=jax.ShapeDtypeStruct((O, B_pad), jnp.float32),
        grid_spec=pltpu.PrefetchScalarGridSpec(
            num_scalar_prefetch=0,
            grid=(n_blocks,),
            in_specs=[
                # x: tiled over batch, f32, batch-major in HBM.
                pl.BlockSpec((block_b, D), lambda i: (i, 0)),
                # weights / bias columns: whole array resident every step.
                pl.BlockSpec((H1, D), lambda i: (0, 0)),
                pl.BlockSpec((H1, 1), lambda i: (0, 0)),
                pl.BlockSpec((H2, H1), lambda i: (0, 0)),
                pl.BlockSpec((H2, 1), lambda i: (0, 0)),
                pl.BlockSpec((O, H2), lambda i: (0, 0)),
                pl.BlockSpec((O, 1), lambda i: (0, 0)),
            ],
            # Feature-major, lane-dense output slab: (O, B_pad) tiled along lanes.
            out_specs=pl.BlockSpec((O, block_b), lambda i: (0, i)),
        ),
        compiler_params=pltpu.CompilerParams(
            dimension_semantics=("parallel",),
        ),
        cost_estimate=cost,
    )(x_p, w1, b1, w2, b2, w3, b3)

    # Back to PyTorch's (B, O) layout.  O == 1 -> layout-free reshape, no transpose.
    if O == 1:
        out = out_t.reshape(B_pad, 1)
    else:
        out = out_t.T
    return out[:B]


def init_params(key, input_dim, output_dim=1):
    """PyTorch nn.Linear-style init (U(-1/sqrt(fan_in), +1/sqrt(fan_in))),
    emitted directly in the kernel's layout so there is zero per-call prep:
    weights bf16 in PyTorch-native (out_features, in_features), biases f32 as
    (out_features, 1) columns.  A trained PyTorch state dict maps 1:1
    (cast weight to bf16 once, reshape bias (out,) -> (out, 1))."""
    def linear_init(k, fan_in, fan_out):
        kw, kb = jax.random.split(k)
        bound = 1.0 / jnp.sqrt(jnp.float32(fan_in))
        w = jax.random.uniform(kw, (fan_out, fan_in), jnp.float32, -bound, bound)
        b = jax.random.uniform(kb, (fan_out, 1), jnp.float32, -bound, bound)
        return w.astype(jnp.bfloat16), b

    k1, k2, k3 = jax.random.split(key, 3)
    w1, b1 = linear_init(k1, input_dim, 64)
    w2, b2 = linear_init(k2, 64, 64)
    w3, b3 = linear_init(k3, 64, output_dim)
    return {"w1": w1, "b1": b1, "w2": w2, "b2": b2, "w3": w3, "b3": b3}


def reference_forward(x, p):
    """Pure-JAX f32 reference (weights de-quantized from the stored bf16)."""
    w1 = p["w1"].astype(jnp.float32)
    w2 = p["w2"].astype(jnp.float32)
    w3 = p["w3"].astype(jnp.float32)
    b1 = p["b1"].reshape(-1)
    b2 = p["b2"].reshape(-1)
    b3 = p["b3"].reshape(-1)
    h = jnp.maximum(x @ w1.T + b1, 0.0)
    h = jnp.maximum(h @ w2.T + b2, 0.0)
    return jax.nn.sigmoid(h @ w3.T + b3)


if __name__ == "__main__":
    key = jax.random.PRNGKey(0)
    k_param, k_x = jax.random.split(key)

    batch = 500        # not lane-aligned -> exercises the (single-op) pad path;
                       # auto block_b = 256 -> grid=(2,), both v7x TCs get a step.
    input_dim = 32     # feature vector describing a state transition
    output_dim = 1

    params = init_params(k_param, input_dim, output_dim)
    x = jax.random.normal(k_x, (batch, input_dim), jnp.float32)

    out = transition_likelihood_nn(x, params)
    out = jax.block_until_ready(out)

    ref = reference_forward(x, params)
    assert out.shape == (batch, output_dim)
    # bf16 MXU inputs vs f32 reference; exact sigmoid -> tight tolerance.
    max_err = float(jnp.max(jnp.abs(out - ref)))
    assert max_err < 1e-2, (max_err, out[:4], ref[:4])

    print("KERNEL_OK")
</pallas_src>

<mosaic_0001>
module attributes {stable_mosaic.version = 11 : i64} {
  func.func @_mlp_kernel(%arg0: i32, %arg1: memref<256x32xf32, #tpu.memory_space<vmem>>, %arg2: memref<64x32xbf16, #tpu.memory_space<vmem>>, %arg3: memref<64x1xf32, #tpu.memory_space<vmem>>, %arg4: memref<64x64xbf16, #tpu.memory_space<vmem>>, %arg5: memref<64x1xf32, #tpu.memory_space<vmem>>, %arg6: memref<1x64xbf16, #tpu.memory_space<vmem>>, %arg7: memref<1x1xf32, #tpu.memory_space<vmem>>, %arg8: memref<1x256xf32, #tpu.memory_space<vmem>>) attributes {dimension_semantics = [#tpu.dimension_semantics<parallel>], iteration_bounds = array<i64: 2>, scalar_prefetch = 0 : i64, scratch_operands = 0 : i64, tpu.core_type = #tpu.core_type<tc>, window_params = [{transform_indices = @transform_0, window_bounds = array<i64: 256, 32>}, {pipeline_mode = #tpu.pipeline_mode<synchronous>, transform_indices = @transform_1, window_bounds = array<i64: 64, 32>}, {pipeline_mode = #tpu.pipeline_mode<synchronous>, transform_indices = @transform_2, window_bounds = array<i64: 64, 1>}, {pipeline_mode = #tpu.pipeline_mode<synchronous>, transform_indices = @transform_3, window_bounds = array<i64: 64, 64>}, {pipeline_mode = #tpu.pipeline_mode<synchronous>, transform_indices = @transform_4, window_bounds = array<i64: 64, 1>}, {pipeline_mode = #tpu.pipeline_mode<synchronous>, transform_indices = @transform_5, window_bounds = array<i64: 1, 64>}, {pipeline_mode = #tpu.pipeline_mode<synchronous>, transform_indices = @transform_6, window_bounds = array<i64: 1, 1>}, {transform_indices = @transform_7, window_bounds = array<i64: 1, 256>}]} {
    %c0 = arith.constant 0 : index
    %c0_0 = arith.constant 0 : index
    %0 = vector.load %arg1[%c0, %c0_0] : memref<256x32xf32, #tpu.memory_space<vmem>>, vector<256x32xf32>
    %1 = arith.truncf %0 : vector<256x32xf32> to vector<256x32xbf16>
    %c0_1 = arith.constant 0 : index
    %c0_2 = arith.constant 0 : index
    %2 = vector.load %arg2[%c0_1, %c0_2] : memref<64x32xbf16, #tpu.memory_space<vmem>>, vector<64x32xbf16>
    %cst = arith.constant dense<0.000000e+00> : vector<64x256xf32>
    %3 = tpu.matmul %2, %1, %cst {dimension_numbers = #tpu.dot_dimension_numbers<[1], [1], [0], [0], [0, 0, 1, 0], [], []>} : vector<64x32xbf16>, vector<256x32xbf16>, vector<64x256xf32> -> vector<64x256xf32>
    %c0_3 = arith.constant 0 : index
    %c0_4 = arith.constant 0 : index
    %4 = vector.load %arg3[%c0_3, %c0_4] : memref<64x1xf32, #tpu.memory_space<vmem>>, vector<64x1xf32>
    %5 = vector.broadcast %4 : vector<64x1xf32> to vector<64x256xf32>
    %6 = arith.addf %3, %5 : vector<64x256xf32>
    %cst_5 = arith.constant 0.000000e+00 : f32
    %7 = vector.broadcast %cst_5 : f32 to vector<64x256xf32>
    %8 = arith.maximumf %6, %7 : vector<64x256xf32>
    %c0_6 = arith.constant 0 : index
    %c0_7 = arith.constant 0 : index
    %9 = vector.load %arg4[%c0_6, %c0_7] : memref<64x64xbf16, #tpu.memory_space<vmem>>, vector<64x64xbf16>
    %10 = arith.truncf %8 : vector<64x256xf32> to vector<64x256xbf16>
    %cst_8 = arith.constant dense<0.000000e+00> : vector<64x256xf32>
    %11 = tpu.matmul %9, %10, %cst_8 {dimension_numbers = #tpu.dot_dimension_numbers<[1], [0], [0], [1], [0, 0, 1, 1], [], []>} : vector<64x64xbf16>, vector<64x256xbf16>, vector<64x256xf32> -> vector<64x256xf32>
    %c0_9 = arith.constant 0 : index
    %c0_10 = arith.constant 0 : index
    %12 = vector.load %arg5[%c0_9, %c0_10] : memref<64x1xf32, #tpu.memory_space<vmem>>, vector<64x1xf32>
    %13 = vector.broadcast %12 : vector<64x1xf32> to vector<64x256xf32>
    %14 = arith.addf %11, %13 : vector<64x256xf32>
    %cst_11 = arith.constant 0.000000e+00 : f32
    %15 = vector.broadcast %cst_11 : f32 to vector<64x256xf32>
    %16 = arith.maximumf %14, %15 : vector<64x256xf32>
    %c0_12 = arith.constant 0 : index
    %c0_13 = arith.constant 0 : index
    %17 = vector.load %arg6[%c0_12, %c0_13] : memref<1x64xbf16, #tpu.memory_space<vmem>>, vector<1x64xbf16>
    %18 = arith.truncf %16 : vector<64x256xf32> to vector<64x256xbf16>
    %cst_14 = arith.constant dense<0.000000e+00> : vector<1x256xf32>
    %19 = tpu.matmul %17, %18, %cst_14 {dimension_numbers = #tpu.dot_dimension_numbers<[1], [0], [0], [1], [0, 0, 1, 1], [], []>} : vector<1x64xbf16>, vector<64x256xbf16>, vector<1x256xf32> -> vector<1x256xf32>
    %c0_15 = arith.constant 0 : index
    %c0_16 = arith.constant 0 : index
    %20 = vector.load %arg7[%c0_15, %c0_16] : memref<1x1xf32, #tpu.memory_space<vmem>>, vector<1x1xf32>
    %21 = vector.broadcast %20 : vector<1x1xf32> to vector<1x256xf32>
    %22 = arith.addf %19, %21 : vector<1x256xf32>
    %cst_17 = arith.constant 0.000000e+00 : f32
    %23 = vector.broadcast %cst_17 : f32 to vector<1x256xf32>
    %24 = arith.subf %23, %22 : vector<1x256xf32>
    %25 = math.exp %24 : vector<1x256xf32>
    %cst_18 = arith.constant 1.000000e+00 : f32
    %26 = vector.broadcast %cst_18 : f32 to vector<1x256xf32>
    %27 = arith.addf %26, %25 : vector<1x256xf32>
    %cst_19 = arith.constant 1.000000e+00 : f32
    %28 = vector.broadcast %cst_19 : f32 to vector<1x256xf32>
    %29 = arith.divf %28, %27 : vector<1x256xf32>
    %c0_20 = arith.constant 0 : index
    %c0_21 = arith.constant 0 : index
    %30 = vector.load %arg8[%c0_20, %c0_21] : memref<1x256xf32, #tpu.memory_space<vmem>>, vector<1x256xf32>
    tpu.vector_store %arg8[%c0_20, %c0_21], %29 {strides = array<i32>} : memref<1x256xf32, #tpu.memory_space<vmem>>, vector<1x256xf32>,
    return
  }
  func.func @transform_0(%arg0: i32) -> (i32, i32) {
    %c0_i32 = arith.constant 0 : i32
    %c0_i32_0 = arith.constant 0 : i32
    return %arg0, %c0_i32 : i32, i32
  }
  func.func @transform_1(%arg0: i32) -> (i32, i32) {
    %c0_i32 = arith.constant 0 : i32
    %c0_i32_0 = arith.constant 0 : i32
    %c0_i32_1 = arith.constant 0 : i32
    return %c0_i32, %c0_i32_0 : i32, i32
  }
  func.func @transform_2(%arg0: i32) -> (i32, i32) {
    %c0_i32 = arith.constant 0 : i32
    %c0_i32_0 = arith.constant 0 : i32
    %c0_i32_1 = arith.constant 0 : i32
    return %c0_i32, %c0_i32_0 : i32, i32
  }
  func.func @transform_3(%arg0: i32) -> (i32, i32) {
    %c0_i32 = arith.constant 0 : i32
    %c0_i32_0 = arith.constant 0 : i32
    %c0_i32_1 = arith.constant 0 : i32
    return %c0_i32, %c0_i32_0 : i32, i32
  }
  func.func @transform_4(%arg0: i32) -> (i32, i32) {
    %c0_i32 = arith.constant 0 : i32
    %c0_i32_0 = arith.constant 0 : i32
    %c0_i32_1 = arith.constant 0 : i32
    return %c0_i32, %c0_i32_0 : i32, i32
  }
  func.func @transform_5(%arg0: i32) -> (i32, i32) {
    %c0_i32 = arith.constant 0 : i32
    %c0_i32_0 = arith.constant 0 : i32
    %c0_i32_1 = arith.constant 0 : i32
    return %c0_i32, %c0_i32_0 : i32, i32
  }
  func.func @transform_6(%arg0: i32) -> (i32, i32) {
    %c0_i32 = arith.constant 0 : i32
    %c0_i32_0 = arith.constant 0 : i32
    %c0_i32_1 = arith.constant 0 : i32
    return %c0_i32, %c0_i32_0 : i32, i32
  }
  func.func @transform_7(%arg0: i32) -> (i32, i32) {
    %c0_i32 = arith.constant 0 : i32
    %c0_i32_0 = arith.constant 0 : i32
    return %c0_i32, %arg0 : i32, i32
  }
}

</mosaic_0001>

<bundles_post_ra>
// kernel: transition_likelihood_nn.1
= control target key start
LH: loop header
LB: loop body
LE: loop exit
PB: predicated region body
PF: predicated region fallthrough
CT: control target
= control target key end

     0   :  { %s1031_s26 = smov 0   ;;  %s1201_s0 = inlined_call_operand.vmem [shape: f32[512,32], index: 0, kind: input, shape index: {}]   ;;  %s1202_s1 = inlined_call_operand.vmem [shape: bf16[64,32], index: 1, kind: input, shape index: {}]   ;;  %s1203_s2 = inlined_call_operand.vmem [shape: f32[64,1], index: 2, kind: input, shape index: {}]   ;;  %s1204_s3 = inlined_call_operand.vmem [shape: bf16[64,64], index: 3, kind: input, shape index: {}]   ;;  %s1205_s4 = inlined_call_operand.vmem [shape: f32[64,1], index: 4, kind: input, shape index: {}]   ;;  %s1206_s5 = inlined_call_operand.vmem [shape: bf16[1,64], index: 5, kind: input, shape index: {}]   ;;  %s1207_s6 = inlined_call_operand.<no memory space> [shape: f32[1,1], index: 6, kind: input, shape index: {}]   ;;  %s1208_s7 = inlined_call_operand.vmem [shape: f32[1,512], index: 7, kind: output, shape index: {}]  }
   0x1   :  { %v12_v0 = vstv %s1207_s6 }
   0x2   :  { %13 = vst [vmem:[#allocation2] sm:$0x1] %v12_v0 }
   0x3 LB: > { %s891_s27 = sadd.s32 4294967295, %s984_s26   ;;  %p895_p0 = scmp.ge.s32.totalorder %s984_s26, 1  ;;  %s984_s26 = sphi %s1031_s26, %s19_s26  }
   0x4   : > { %p240_p1 = scmp.lt.s32.totalorder %s984_s26, 3 }
   0x6   : > { %p241_p2 = pnand %p895_p0, %p240_p1 }
   0x7   : > { %s896_s28 = sshll.u32 (!%p241_p2), %s891_s27, 5  ;;  %s898_s16 = sshll.u32 (!%p241_p2), %s891_s27, 1 }
   0x8   : > { %244 = sbr.rel (%p241_p2) target bundleno = 812 (0x32c), region = 48  ;;  %p272_p3 = scmp.lt.s32.totalorder (!%p241_p2), %s896_s28, 63 }
   0x9   : > { %p278_p4 = scmp.lt.s32.totalorder (!%p241_p2), %s898_s16, 3 }
   0xd   : > { %v1044_v1 = vld [vmem:[%s1202_s1] sm:$0xff]   ;;  %vm407_vm0 = vcmask 261120   ;;  %s1210_s28 = smov (!%p272_p3, %s896_s28), 63  ;;  %v986_v2 = vmov 0   ;;  %v345_v3 = vld [vmem:[%s1203_s2 + $0x30] sm:$0xff]  ;;  %v346_v5 = vld [vmem:[%s1203_s2 + $0x38] sm:$0xff] }
   0xe   : > { %934 = vmatprep.mubr.msk.bf16.mxu0 %vm407_vm0, %v1044_v1  ;;  %960 = vset.pattern.permute.xlu0 %v986_v2  ;;  %s897_s9 = sshll.u32 %s1210_s28, 3  ;;  %v343_v4 = vld [vmem:[%s1203_s2 + $0x20] sm:$0xff]  ;;  %v344_v6 = vld [vmem:[%s1203_s2 + $0x28] sm:$0xff]  ;;  %v341_v18 = vld [vmem:[%s1203_s2 + $0x10] sm:$0xff]  ;;  %vm641_vm1 = vcmask 523264   ;;  %s1212_s16 = smov (!%p278_p4, %s898_s16), 3 }
   0xf   : > { %961 = vset.pattern.permute.xlu1 %v986_v2  ;;  %686 = vmatprep.mubr.bf16.mxu1 %v986_v2  ;;  %s1060_s14 = scalar_lea.vmem %s1201_s0, %s897_s9  ;;  %v342_v20 = vld [vmem:[%s1203_s2 + $0x18] sm:$0xff]  ;;  %v339_v24 = vld [vmem:[%s1203_s2] sm:$0xff]  ;;  %v340_v25 = vld [vmem:[%s1203_s2 + $0x8] sm:$0xff]  ;;  %s280_s19 = scalar_lea.vmem %s1208_s7, %s1212_s16 }
  0x10   : > { %379 = vperm.xlu0 %960, %v345_v3   ;;  %369 = vperm.xlu1 %961, %v343_v4   ;;  %v313_v7 = vld [vmem:[%s1060_s14 + $0xf0] sm:$0xff]  ;;  %v314_v8 = vld [vmem:[%s1060_s14 + $0xf8] sm:$0xff]  ;;  %v311_v12 = vld [vmem:[%s1060_s14 + $0xe0] sm:$0xff] }
  0x11   : > { %v297_v9 = vld [vmem:[%s1060_s14 + $0x70] sm:$0xff]  ;;  %v330_v10 = vpack.c.bf16 %v314_v8, %v313_v7  ;;  %v298_v11 = vld [vmem:[%s1060_s14 + $0x78] sm:$0xff]  ;;  %v312_v13 = vld [vmem:[%s1060_s14 + $0xe8] sm:$0xff] }
  0x12   : > { %v322_v14 = vpack.c.bf16 %v298_v11, %v297_v9  ;;  %v329_v15 = vpack.c.bf16 %v312_v13, %v311_v12  ;;  %v295_v16 = vld [vmem:[%s1060_s14 + $0x60] sm:$0xff]  ;;  %v296_v17 = vld [vmem:[%s1060_s14 + $0x68] sm:$0xff]  ;;  %v309_v22 = vld [vmem:[%s1060_s14 + $0xd0] sm:$0xff] }
  0x13   : > { %942 = vmatprep.subr.msk.bf16.mxu0 %vm407_vm0, %v330_v10  ;;  %v321_v21 = vpack.c.bf16 %v296_v17, %v295_v16  ;;  %v310_v23 = vld [vmem:[%s1060_s14 + $0xd8] sm:$0xff]  ;;  %v293_v28 = vld [vmem:[%s1060_s14 + $0x50] sm:$0xff]  ;;  %v307_v32 = vld [vmem:[%s1060_s14 + $0xc0] sm:$0xff] }
  0x14   : > { %384 = vperm.xlu0 %960, %v346_v5   ;;  %374 = vperm.xlu1 %961, %v344_v6   ;;  %v442_v19 = vsel %vm407_vm0, %v322_v14, 0  ;;  %v328_v27 = vpack.c.bf16 %v310_v23, %v309_v22  ;;  %v294_v29 = vld [vmem:[%s1060_s14 + $0x58] sm:$0xff]  ;;  %v579_v30 = vld [vmem:[%s1205_s4 + $0x30] sm:$0xff]  ;;  %v308_v33 = vld [vmem:[%s1060_s14 + $0xc8] sm:$0xff] }
  0x15   : > { %919 = vmatpush3.bf16.xpose.msra.mxu0 %v442_v19  ;;  %v439_v26 = vsel %vm407_vm0, %v321_v21, 0  ;;  %v580_v31 = vld [vmem:[%s1205_s4 + $0x38] sm:$0xff]  ;;  %v577_v34 = vld [vmem:[%s1205_s4 + $0x20] sm:$0xff]  ;;  %v320_v35 = vpack.c.bf16 %v294_v29, %v293_v28  ;;  %v578_v36 = vld [vmem:[%s1205_s4 + $0x28] sm:$0xff]  ;;  %v327_v38 = vpack.c.bf16 %v308_v33, %v307_v32 }
  0x16   : > { %943 = vmatprep.subr.msk.bf16.mxu0 %vm407_vm0, %v329_v15  ;;  %v291_v39 = vld [vmem:[%s1060_s14 + $0x40] sm:$0xff]  ;;  %v292_v40 = vld [vmem:[%s1060_s14 + $0x48] sm:$0xff]  ;;  %v575_v41 = vld [vmem:[%s1205_s4 + $0x10] sm:$0xff] }
  0x17   : > { %v436_v37 = vsel %vm407_vm0, %v320_v35, 0  ;;  %v576_v42 = vld [vmem:[%s1205_s4 + $0x18] sm:$0xff]  ;;  %v319_v43 = vpack.c.bf16 %v292_v40, %v291_v39  ;;  %v305_v44 = vld [vmem:[%s1060_s14 + $0xb0] sm:$0xff]  ;;  %v573_v46 = vld [vmem:[%s1205_s4] sm:$0xff] }
  0x18   : > { %359 = vperm.xlu0 %960, %v341_v18   ;;  %364 = vperm.xlu1 %961, %v342_v20   ;;  %v306_v45 = vld [vmem:[%s1060_s14 + $0xb8] sm:$0xff]  ;;  %v574_v47 = vld [vmem:[%s1205_s4 + $0x8] sm:$0xff]  ;;  %v289_v50 = vld [vmem:[%s1060_s14 + $0x30] sm:$0xff] }
  0x19   : > { %v433_v48 = vsel %vm407_vm0, %v319_v43, 0  ;;  %v326_v49 = vpack.c.bf16 %v306_v45, %v305_v44  ;;  %v290_v51 = vld [vmem:[%s1060_s14 + $0x38] sm:$0xff]  ;;  %v752_v52 = vld [vmem:[#allocation2] sm:$0x1]  ;;  %v304_v55 = vld [vmem:[%s1060_s14 + $0xa8] sm:$0xff] }
  0x1a   : > { %v318_v53 = vpack.c.bf16 %v290_v51, %v289_v50  ;;  %v303_v54 = vld [vmem:[%s1060_s14 + $0xa0] sm:$0xff]  ;;  %v288_v59 = vld [vmem:[%s1060_s14 + $0x28] sm:$0xff]  ;;  %v301_v61 = vld [vmem:[%s1060_s14 + $0x90] sm:$0xff] }
  0x1b   : > { %v325_v57 = vpack.c.bf16 %v304_v55, %v303_v54  ;;  %v287_v58 = vld [vmem:[%s1060_s14 + $0x20] sm:$0xff]  ;;  %v302_v62 = vld [vmem:[%s1060_s14 + $0x98] sm:$0xff]  ;;  %v285_v3 = vld [vmem:[%s1060_s14 + $0x10] sm:$0xff] }
  0x1c   : > { %349 = vperm.xlu0 %960, %v339_v24   ;;  %354 = vperm.xlu1 %961, %v340_v25   ;;  %v430_v56 = vsel %vm407_vm0, %v318_v53, 0  ;;  %v317_v60 = vpack.c.bf16 %v288_v59, %v287_v58  ;;  %v324_v0 = vpack.c.bf16 %v302_v62, %v301_v61  ;;  %v286_v4 = vld [vmem:[%s1060_s14 + $0x18] sm:$0xff]  ;;  %v299_v6 = vld [vmem:[%s1060_s14 + $0x80] sm:$0xff]  ;;  %v300_v7 = vld [vmem:[%s1060_s14 + $0x88] sm:$0xff] }
  0x1d   : > { %921 = vmatpush3.bf16.xpose.msra.mxu0 %v439_v26  ;;  %v316_v5 = vpack.c.bf16 %v286_v4, %v285_v3  ;;  %v323_v9 = vpack.c.bf16 %v300_v7, %v299_v6  ;;  %v283_v10 = vld [vmem:[%s1060_s14] sm:$0xff]  ;;  %v284_v11 = vld [vmem:[%s1060_s14 + $0x8] sm:$0xff]  ;;  %v964_v15 = vld [vmem:[%s1202_s1 + $0x10] sm:$0xff]  }
  0x1e   : > { %944 = vmatprep.subr.msk.bf16.mxu0 %vm407_vm0, %v328_v27  ;;  %v427_v63 = vsel %vm407_vm0, %v317_v60, 0  ;;  %v315_v12 = vpack.c.bf16 %v284_v11, %v283_v10  ;;  %v963_v14 = vld [vmem:[%s1202_s1 + $0x8] sm:$0xff]   ;;  %v965_v16 = vld [vmem:[%s1202_s1 + $0x18] sm:$0xff]  }
  0x1f   : > { %v424_v8 = vsel %vm407_vm0, %v316_v5, 0 }
  0x20   : > { %613 = vperm.xlu0 %960, %v579_v30   ;;  %618 = vperm.xlu1 %961, %v580_v31   ;;  %v421_v13 = vsel %vm407_vm0, %v315_v12, 0 }
  0x24   : > { %603 = vperm.xlu0 %960, %v577_v34   ;;  %608 = vperm.xlu1 %961, %v578_v36  }
  0x25   : > { %923 = vmatpush3.bf16.xpose.msra.mxu0 %v436_v37 }
  0x26   : > { %945 = vmatprep.subr.msk.bf16.mxu0 %vm407_vm0, %v327_v38 }
  0x28   : > { %593 = vperm.xlu0 %960, %v575_v41   ;;  %598 = vperm.xlu1 %961, %v576_v42  }
  0x2c   : > { %583 = vperm.xlu0 %960, %v573_v46   ;;  %588 = vperm.xlu1 %961, %v574_v47  }
  0x2d   : > { %925 = vmatpush3.bf16.xpose.msra.mxu0 %v433_v48 }
  0x2e   : > { %946 = vmatprep.subr.msk.bf16.mxu0 %vm407_vm0, %v326_v49 }
  0x30   : > { %755 = vperm.xlu0 %960, %v752_v52  }
  0x35   : > { %927 = vmatpush3.bf16.xpose.msra.mxu0 %v430_v56 }
  0x36   : > { %947 = vmatprep.subr.msk.bf16.mxu0 %vm407_vm0, %v325_v57 }
  0x3d   : > { %929 = vmatpush3.bf16.xpose.msra.mxu0 %v427_v63 }
  0x3e   : > { %948 = vmatprep.subr.msk.bf16.mxu0 %vm407_vm0, %v324_v0 }
  0x45   : > { %931 = vmatpush3.bf16.xpose.msra.mxu0 %v424_v8 }
  0x46   : > { %949 = vmatprep.subr.msk.bf16.mxu0 %vm407_vm0, %v323_v9 }
  0x4d   : > { %933 = vmatpush3.bf16.xpose.msra.mxu0 %v421_v13 }
  0x54   : > { %935 = vmatmul.mubr.msk.bf16.vlgmr.msra.gmra.mxu0 %vm407_vm0, %v1044_v1 }
  0x55   : > { %936 = vmatprep.mubr.msk.bf16.mxu0 %vm407_vm0, %v963_v14 }
  0x5c   : > { %937 = vmatmul.mubr.msk.bf16.gmra.mxu0 %vm407_vm0, %v963_v14 }
  0x5d   : > { %938 = vmatprep.mubr.msk.bf16.mxu0 %vm407_vm0, %v964_v15 }
  0x64   : > { %939 = vmatmul.mubr.msk.bf16.gmra.mxu0 %vm407_vm0, %v964_v15 }
  0x65   : > { %940 = vmatprep.mubr.msk.bf16.mxu0 %vm407_vm0, %v965_v16 }
  0x6c   : > { %941 = vmatmul.mubr.msk.bf16.gmra.mxu0 %vm407_vm0, %v965_v16 }
  0x8b   : > { %v370_v25 = vpop.permute.xlu1 %369  ;;  %v380_v27 = vpop.permute.xlu0 %379 }
  0x8f   : > { %v375_v30 = vpop.permute.xlu1 %374  ;;  %v385_v32 = vpop.permute.xlu0 %384 }
  0x93   : > { %v365_v38 = vpop.permute.xlu1 %364  ;;  %v360_v43 = vpop.permute.xlu0 %359 }
  0x97   : > { %v355_v55 = vpop.permute.xlu1 %354  ;;  %v350_v62 = vpop.permute.xlu0 %349 }
 0x114   : > { %v502_v1 = vpop.f32.mrf.mxu0 }
 0x115   : > { %v503_v10 = vadd.f32 %v502_v1, %v350_v62  ;;  %v967_v1 = vld [vmem:[%s1204_s3 + $0x8] sm:$0xff]  }
 0x116   : > { %v504_v17 = vpop.f32.mrf.mxu0 }
 0x117   : > { %v505_v3 = vadd.f32 %v504_v17, %v350_v62  ;;  %v541_v16 = vmax.f32 %v503_v10, 0.0  ;;  %v966_v17 = vld [vmem:[%s1204_s3] sm:$0xff]  }
 0x118   : > { %v506_v18 = vpop.f32.mrf.mxu0 }
 0x119   : > { %v507_v5 = vadd.f32 %v506_v18, %v355_v55  ;;  %v542_v12 = vmax.f32 %v505_v3, 0.0  ;;  %v968_v18 = vld [vmem:[%s1204_s3 + $0x10] sm:$0xff]  }
 0x11a   : > { %v508_v19 = vpop.f32.mrf.mxu0 }
 0x11b   : > { %v509_v59 = vadd.f32 %v508_v19, %v355_v55  ;;  %v543_v13 = vmax.f32 %v507_v5, 0.0 }
 0x11c   : > { %v512_v20 = vpop.f32.mrf.mxu0 }
 0x11d   : > { %v513_v63 = vadd.f32 %v512_v20, %v360_v43  ;;  %v544_v8 = vmax.f32 %v509_v59, 0.0  ;;  %v565_v19 = vpack.c.bf16 %v543_v13, %v541_v16  ;;  %v969_v20 = vld [vmem:[%s1204_s3 + $0x18] sm:$0xff]  }
 0x11e   : > { %v514_v21 = vpop.f32.mrf.mxu0 }
 0x11f   : > { %v515_v52 = vadd.f32 %v514_v21, %v360_v43  ;;  %v545_v11 = vmax.f32 %v513_v63, 0.0  ;;  %v566_v15 = vpack.c.bf16 %v544_v8, %v542_v12 }
 0x120   : > { %v516_v22 = vpop.f32.mrf.mxu0 }
 0x121   : > { %v517_v56 = vadd.f32 %v516_v22, %v365_v38  ;;  %v546_v4 = vmax.f32 %v515_v52, 0.0 }
 0x122   : > { %v518_v23 = vpop.f32.mrf.mxu0 }
 0x123   : > { %v519_v46 = vadd.f32 %v518_v23, %v365_v38  ;;  %v547_v6 = vmax.f32 %v517_v56, 0.0 }
 0x124   : > { %v522_v24 = vpop.f32.mrf.mxu0 }
 0x125   : > { %v523_v50 = vadd.f32 %v522_v24, %v370_v25  ;;  %v548_v60 = vmax.f32 %v519_v46, 0.0  ;;  %v567_v14 = vpack.c.bf16 %v547_v6, %v545_v11 }
 0x126   : > { %v524_v26 = vpop.f32.mrf.mxu0 }
 0x127   : > { %v525_v41 = vadd.f32 %v524_v26, %v370_v25  ;;  %v549_v0 = vmax.f32 %v523_v50, 0.0  ;;  %v568_v9 = vpack.c.bf16 %v548_v60, %v546_v4 }
 0x128   : > { %v526_v28 = vpop.f32.mrf.mxu0 }
 0x129   : > { %v527_v44 = vadd.f32 %v526_v28, %v375_v30  ;;  %v550_v53 = vmax.f32 %v525_v41, 0.0 }
 0x12a   : > { %v528_v29 = vpop.f32.mrf.mxu0 }
 0x12b   : > { %v529_v35 = vadd.f32 %v528_v29, %v375_v30  ;;  %v551_v57 = vmax.f32 %v527_v44, 0.0  ;;  %v619_v30 = vpop.permute.xlu1 %618 }
 0x12c   : > { %v532_v31 = vpop.f32.mrf.mxu0 }
 0x12d   : > { %v533_v39 = vadd.f32 %v532_v31, %v380_v27  ;;  %v552_v47 = vmax.f32 %v529_v35, 0.0  ;;  %v569_v7 = vpack.c.bf16 %v551_v57, %v549_v0 }
 0x12e   : > { %v534_v33 = vpop.f32.mrf.mxu0 }
 0x12f   : > { %v535_v36 = vadd.f32 %v534_v33, %v380_v27  ;;  %v553_v51 = vmax.f32 %v533_v39, 0.0  ;;  %v570_v61 = vpack.c.bf16 %v552_v47, %v550_v53  ;;  %v609_v35 = vpop.permute.xlu1 %608 }
 0x130   : > { %v536_v34 = vpop.f32.mrf.mxu0 }
 0x131   : > { %v537_v37 = vadd.f32 %v536_v34, %v385_v32  ;;  %v554_v48 = vmax.f32 %v535_v36, 0.0 }
 0x132   : > { %v538_v40 = vpop.f32.mrf.mxu0 }
 0x133   : > { %v539_v42 = vadd.f32 %v538_v40, %v385_v32  ;;  %v555_v45 = vmax.f32 %v537_v37, 0.0  ;;  %v614_v32 = vpop.permute.xlu0 %613 }
 0x135   : > { %v556_v49 = vmax.f32 %v539_v42, 0.0  ;;  %v571_v58 = vpack.c.bf16 %v555_v45, %v553_v51  ;;  %v599_v42 = vpop.permute.xlu1 %598 }
 0x137   : > { %v572_v54 = vpack.c.bf16 %v556_v49, %v554_v48  ;;  %v604_v37 = vpop.permute.xlu0 %603 }
 0x139   : > { %662 = vmatprep.subr.bf16.mxu1 %v572_v54  ;;  %v589_v59 = vpop.permute.xlu1 %588 }
 0x13a   : > { %663 = vmatpush1.bf16.msra.mxu1 %v571_v58 }
 0x13b   : > { %664 = vmatprep.subr.bf16.mxu1 %v570_v61  ;;  %v594_v47 = vpop.permute.xlu0 %593 }
 0x13e   : > { %665 = vmatpush1.bf16.msra.mxu1 %v569_v7 }
 0x13f   : > { %666 = vmatprep.subr.bf16.mxu1 %v568_v9  ;;  %v584_v4 = vpop.permute.xlu0 %583 }
 0x142   : > { %667 = vmatpush1.bf16.msra.mxu1 %v567_v14 }
 0x143   : > { %668 = vmatprep.subr.bf16.mxu1 %v566_v15 }
 0x146   : > { %669 = vmatpush1.bf16.msra.mxu1 %v565_v19 }
 0x149   : > { %911 = vmatmul.mubr.msk.bf16.vlgmr.msra.gmra.mxu1 %vm641_vm1, %v966_v17 }
 0x14a   : > { %696 = vmatprep.mubr.bf16.mxu1 %v986_v2 }
 0x151   : > { %912 = vmatmul.mubr.msk.bf16.gmra.mxu1 %vm641_vm1, %v967_v1 }
 0x152   : > { %706 = vmatprep.mubr.bf16.mxu1 %v986_v2 }
 0x159   : > { %913 = vmatmul.mubr.msk.bf16.gmra.mxu1 %vm641_vm1, %v968_v18 }
 0x15a   : > { %716 = vmatprep.mubr.bf16.mxu1 %v986_v2 }
 0x161   : > { %914 = vmatmul.mubr.msk.bf16.gmra.mxu1 %vm641_vm1, %v969_v20 }
 0x162   : > { %797 = vmatprep.mubr.bf16.mxu1 %v986_v2 }
 0x209   : > { %v688_v21 = vpop.f32.mrf.mxu1 }
 0x20a   : > { %v689_v14 = vadd.f32 %v688_v21, %v584_v4 }
 0x20b   : > { %v690_v22 = vpop.f32.mrf.mxu1 }
 0x20c   : > { %v691_v7 = vadd.f32 %v690_v22, %v584_v4  ;;  %v727_v18 = vmax.f32 %v689_v14, 0.0  ;;  %v743_v22 = vld [vmem:[%s1206_s5] sm:$0x1] }
 0x20d   : > { %v692_v23 = vpop.f32.mrf.mxu1 }
 0x20e   : > { %v693_v9 = vadd.f32 %v692_v23, %v589_v59  ;;  %v728_v16 = vmax.f32 %v691_v7, 0.0  ;;  %v758_v23 = vlaneseq }
 0x20f   : > { %v694_v24 = vpop.f32.mrf.mxu1 }
 0x210   : > { %v695_v63 = vadd.f32 %v694_v24, %v589_v59  ;;  %v729_v19 = vmax.f32 %v693_v9, 0.0  ;;  %v759_v21 = vshrl.u32 %v758_v23, 7  ;;  %vm838_vm2 = vcmp.lt.s32.totalorder %v758_v23, 256 }
 0x211   : > { %v698_v25 = vpop.f32.mrf.mxu1 }
 0x212   : > { %v699_v5 = vadd.f32 %v698_v25, %v594_v47  ;;  %v730_v12 = vmax.f32 %v695_v63, 0.0  ;;  %v744_v20 = vpack.c.bf16 %v729_v19, %v727_v18  ;;  %v760_v24 = vsub.s32 0, %v759_v21  ;;  %v756_v25 = vpop.permute.xlu0 %755 }
 0x213   : > { %v700_v26 = vpop.f32.mrf.mxu1 }
 0x214   : > { %v701_v56 = vadd.f32 %v700_v26, %v594_v47  ;;  %v731_v15 = vmax.f32 %v699_v5, 0.0  ;;  %v745_v1 = vpack.c.bf16 %v730_v12, %v728_v16  ;;  %v761_v26 = vrot.slane %v756_v25, %v760_v24 }
 0x215   : > { %v702_v27 = vpop.f32.mrf.mxu1 }
 0x216   : > { %v703_v60 = vadd.f32 %v702_v27, %v599_v42  ;;  %v732_v8 = vmax.f32 %v701_v56, 0.0 }
 0x217   : > { %v704_v28 = vpop.f32.mrf.mxu1 }
 0x218   : > { %v705_v50 = vadd.f32 %v704_v28, %v599_v42  ;;  %v733_v10 = vmax.f32 %v703_v60, 0.0 }
 0x219   : > { %v708_v29 = vpop.f32.mrf.mxu1 }
 0x21a   : > { %v709_v54 = vadd.f32 %v708_v29, %v604_v37  ;;  %v734_v0 = vmax.f32 %v705_v50, 0.0  ;;  %v746_v17 = vpack.c.bf16 %v733_v10, %v731_v15 }
 0x21b   : > { %v710_v31 = vpop.f32.mrf.mxu1 }
 0x21c   : > { %v711_v45 = vadd.f32 %v710_v31, %v604_v37  ;;  %v735_v6 = vmax.f32 %v709_v54, 0.0  ;;  %v747_v13 = vpack.c.bf16 %v734_v0, %v732_v8 }
 0x21d   : > { %v712_v33 = vpop.f32.mrf.mxu1 }
 0x21e   : > { %v713_v48 = vadd.f32 %v712_v33, %v609_v35  ;;  %v736_v57 = vmax.f32 %v711_v45, 0.0 }
 0x21f   : > { %v714_v34 = vpop.f32.mrf.mxu1 }
 0x220   : > { %v715_v2 = vadd.f32 %v714_v34, %v609_v35  ;;  %v737_v61 = vmax.f32 %v713_v48, 0.0 }
 0x221   : > { %v718_v36 = vpop.f32.mrf.mxu1 }
 0x222   : > { %v719_v43 = vadd.f32 %v718_v36, %v614_v32  ;;  %v738_v51 = vmax.f32 %v715_v2, 0.0  ;;  %v748_v11 = vpack.c.bf16 %v737_v61, %v735_v6 }
 0x223   : > { %v720_v38 = vpop.f32.mrf.mxu1 }
 0x224   : > { %v721_v40 = vadd.f32 %v720_v38, %v614_v32  ;;  %v739_v55 = vmax.f32 %v719_v43, 0.0  ;;  %v749_v3 = vpack.c.bf16 %v738_v51, %v736_v57 }
 0x225   : > { %v722_v39 = vpop.f32.mrf.mxu1 }
 0x226   : > { %v723_v41 = vadd.f32 %v722_v39, %v619_v30  ;;  %v740_v52 = vmax.f32 %v721_v40, 0.0  ;;  %v987_v40 = vmov 1966171168  }
 0x227   : > { %v724_v44 = vpop.f32.mrf.mxu1 }
 0x228   : > { %v725_v46 = vadd.f32 %v724_v44, %v619_v30  ;;  %v741_v49 = vmax.f32 %v723_v41, 0.0  ;;  %v822_v41 = vunpack.c.l.s4 %v987_v40 }
 0x22a   : > { %v742_v53 = vmax.f32 %v725_v46, 0.0  ;;  %v750_v62 = vpack.c.bf16 %v741_v49, %v739_v55  ;;  %v823_v42 = vunpack.c.0.s8 %v822_v41 }
 0x22c   : > { %v751_v58 = vpack.c.bf16 %v742_v53, %v740_v52  ;;  %v826_v44 = vsub.s32 %v823_v42, %v759_v21 }
 0x22e   : > { %773 = vmatprep.subr.bf16.mxu1 %v751_v58 }
 0x22f   : > { %774 = vmatpush1.bf16.msra.mxu1 %v750_v62 }
 0x230   : > { %775 = vmatprep.subr.bf16.mxu1 %v749_v3 }
 0x233   : > { %776 = vmatpush1.bf16.msra.mxu1 %v748_v11 }
 0x234   : > { %777 = vmatprep.subr.bf16.mxu1 %v747_v13 }
 0x237   : > { %778 = vmatpush1.bf16.msra.mxu1 %v746_v17 }
 0x238   : > { %779 = vmatprep.subr.bf16.mxu1 %v745_v1 }
 0x23b   : > { %780 = vmatpush1.bf16.msra.mxu1 %v744_v20 }
 0x23e   : > { %915 = vmatmul.mubr.msk.bf16.vlgmr.msra.gmra.mxu1 %vm641_vm1, %v743_v22 }
 0x2fe   : > { %v799_v27 = vpop.f32.mrf.mxu1 }
 0x2ff   : > { %v800_v28 = vadd.f32 %v799_v27, %v761_v26 }
 0x300   : > { %v801_v29 = vpop.f32.mrf.mxu1 }
 0x301   : > { %v806_v30 = vsub.f32 0.0, %v800_v28  ;;  %v802_v31 = vadd.f32 %v801_v29, %v761_v26 }
 0x302   : > { %v803_v32 = vpop.f32.mrf.mxu1 }
 0x303   : > { %v808_v33 = vmul.f32 1.442695, %v806_v30  ;;  %v807_v34 = vsub.f32 0.0, %v802_v31 }
 0x304   : > { %v804_v35 = vpop.f32.mrf.mxu1 }
 0x305   : > { %970 = vpow2.f32 %v808_v33  ;;  %v810_v36 = vmul.f32 1.442695, %v807_v34 }
 0x307   : > { %972 = vpow2.f32 %v810_v36 }
 0x312   : > { %v971_v37 = vpop.eup %970 }
 0x313   : > { %v812_v38 = vadd.f32 1.0, %v971_v37 }
 0x314   : > { %v973_v39 = vpop.eup %972 }
 0x315   : > { %v813_v2 = vadd.f32 1.0, %v973_v39  ;;  %974 = vrcp.f32 %v812_v38 }
 0x317   : > { %976 = vrcp.f32 %v813_v2 }
 0x322   : > { %v975_v43 = vpop.eup %974 }
 0x324   : > { %v977_v45 = vpop.eup %976 }
 0x325   : > { %v820_v46 = vcombine.low %v975_v43, %v977_v45 }
 0x327   : > { %v827_v47 = vrot.slane %v820_v46, %v826_v44 }
 0x329   : > { %v834_v48 = vrot.slane %v827_v47, %v826_v44 }
 0x32b   : > { %840 = vst.msk [vmem:[%s280_s19] sm:$0x3] %vm838_vm2, %v834_v48 }
 0x32c PF: > { %s19_s26 = sadd.s32 1, %s984_s26  }
 0x32d   : > { %p16_p5 = scmp.ge.s32.totalorder %s19_s26, 4  }
 0x32f   :  { %18 = sbr.rel (!%p16_p5) target bundleno = 3 (0x3), region = 78 }

</bundles_post_ra>
